<compile_context>
chip_gen: v7x
topology: tpu7x:2x2x1
jax: 0.10.0
libtpu: 0.0.40
codegen_flags: <defaults>
</compile_context>

<pallas_src>
import math

import jax
import jax.numpy as jnp
from jax.experimental import pallas as pl
from jax.experimental.pallas import tpu as pltpu

# ---- small config consistent with the module ----
B = 2            # batch
S = 8            # sequence length
H = 32           # hidden_size
NH = 4           # num_attention_heads
HD = H // NH     # attention_head_size
I = 4 * H        # intermediate_size
BS = B * S       # folded batch*seq rows
EPS = 1e-12
NEG_BIG = -1e9   # cross-batch additive mask (softmax prob underflows to 0)

SLAB_W = 128             # lane-dense combined output width (multiple of 128 -> unmasked store)
SC_W = NH * BS           # 64 lanes of attention scores
PAD_W = SLAB_W - H - SC_W

assert 3 * H <= I, "bias-packing layout requires intermediate_size >= 3*hidden"
assert PAD_W >= 0


def _layer_norm(x, gamma, beta):
    mu = jnp.mean(x, axis=-1, keepdims=True)
    var = jnp.mean(jnp.square(x - mu), axis=-1, keepdims=True)
    return (x - mu) * jax.lax.rsqrt(var + EPS) * gamma + beta


def _erf_poly(z):
    # Abramowitz & Stegun 7.1.26 (max abs err ~1.5e-7); uses only exp/mul/add/where.
    p = 0.3275911
    a1, a2, a3, a4, a5 = 0.254829592, -0.284496736, 1.421413741, -1.453152027, 1.061405429
    az = jnp.abs(z)
    t = 1.0 / (1.0 + p * az)
    poly = ((((a5 * t + a4) * t + a3) * t + a2) * t + a1) * t
    y = 1.0 - poly * jnp.exp(-az * az)
    return jnp.where(z >= 0.0, y, -y)


def _gelu_kernel(x):
    # BERT's ACT2FN["gelu"]: x * 0.5 * (1 + erf(x / sqrt(2)))
    return x * 0.5 * (1.0 + _erf_poly(x * (1.0 / math.sqrt(2.0))))


def _gelu_ref(x):
    return x * 0.5 * (1.0 + jax.lax.erf(x / jnp.sqrt(2.0).astype(x.dtype)))


def encoder_layer_kernel(
    x_ref, mask_ref, wqkv_ref, wo_ref, w1_ref, w2_ref, vec_ref, out_ref,
):
    x = x_ref[...]          # (BS, H)
    mask = mask_ref[...]    # (BS, BS) block-diag additive mask
    vecs = vec_ref[...]     # (8, I) packed small vectors

    bqkv = vecs[0:1, :3 * H]   # (1, 3H)
    bo   = vecs[1:2, :H]
    g1   = vecs[2:3, :H]
    be1  = vecs[3:4, :H]
    b1   = vecs[4:5, :]        # (1, I)
    b2   = vecs[5:6, :H]
    g2   = vecs[6:7, :H]
    be2  = vecs[7:8, :H]

    # Fused QKV projection: one matmul, 96-lane-wide output.
    qkv = jnp.dot(x, wqkv_ref[...], preferred_element_type=jnp.float32) + bqkv  # (BS, 3H)

    inv_sqrt_hd = 1.0 / math.sqrt(HD)
    score_chunks = []
    ctx_chunks = []
    for h in range(NH):  # static unrolled loop over heads (both batches at once)
        qh = qkv[:, h * HD:(h + 1) * HD]               # (BS, HD)
        kh = qkv[:, H + h * HD:H + (h + 1) * HD]       # (BS, HD)
        vh = qkv[:, 2 * H + h * HD:2 * H + (h + 1) * HD]

        # q @ k^T without an explicit transpose: contract on the HD axis of both operands.
        s = jax.lax.dot_general(
            qh, kh, (((1,), (1,)), ((), ())),
            preferred_element_type=jnp.float32) * inv_sqrt_hd
        s = s + mask                                   # (BS, BS)
        score_chunks.append(s)

        # Softmax over keys (cross-batch entries are ~-1e9 -> exp underflows to 0).
        m = jnp.max(s, axis=-1, keepdims=True)
        e = jnp.exp(s - m)
        denom = jnp.sum(e, axis=-1, keepdims=True)
        prob = e * pl.reciprocal(denom, approx=False)

        ctx_chunks.append(jnp.dot(prob, vh, preferred_element_type=jnp.float32))

    ctx = jnp.concatenate(ctx_chunks, axis=-1)         # (BS, H)   register concat
    scores = jnp.concatenate(score_chunks, axis=-1)    # (BS, NH*BS)

    # BertSelfOutput: dense + residual(q-input == x) + LayerNorm
    att = jnp.dot(ctx, wo_ref[...], preferred_element_type=jnp.float32) + bo
    slf = _layer_norm(att + x, g1, be1)                # (BS, H)

    # BertIntermediate: dense + gelu
    inter = _gelu_kernel(
        jnp.dot(slf, w1_ref[...], preferred_element_type=jnp.float32) + b1)

    # BertOutput: dense + residual(slf) + LayerNorm
    y = jnp.dot(inter, w2_ref[...], preferred_element_type=jnp.float32) + b2
    y = _layer_norm(y + slf, g2, be2)                  # (BS, H)

    # Single lane-dense 128-wide store: [output | scores | zero pad]
    pad = jnp.zeros((BS, PAD_W), jnp.float32)
    out_ref[...] = jnp.concatenate([y, scores, pad], axis=-1)


def encoder_layer(x, mask, params):
    """x: (B, S, H) f32, mask: (B, S, S) additive f32."""
    (wq, bq, wk, bk, wv, bv, wo, bo, g1, be1, w1, b1, w2, b2, g2, be2) = params

    # --- wrapper-side layout plumbing (free relative to kernel overhead) ---
    wqkv = jnp.concatenate([wq, wk, wv], axis=1)       # (H, 3H)
    bqkv = jnp.concatenate([bq, bk, bv], axis=1)       # (1, 3H)
    pad = lambda v: jnp.pad(v, ((0, 0), (0, I - v.shape[1])))
    vecs = jnp.concatenate(
        [pad(bqkv), pad(bo), pad(g1), pad(be1), b1, pad(b2), pad(g2), pad(be2)],
        axis=0)                                        # (8, I)

    x_flat = x.reshape(BS, H)

    # Block-diagonal additive mask: within-batch blocks = original mask,
    # cross-batch blocks = -1e9 (softmax prob underflows to exactly 0).
    big = jnp.full((B, B, S, S), NEG_BIG, jnp.float32)
    big = big.at[jnp.arange(B), jnp.arange(B)].set(mask.astype(jnp.float32))
    mask_slab = big.transpose(0, 2, 1, 3).reshape(BS, BS)

    full = lambda shape: pl.BlockSpec(shape, lambda i, _s=shape: (0,) * len(_s))
    fn = pl.pallas_call(
        encoder_layer_kernel,
        grid_spec=pltpu.PrefetchScalarGridSpec(
            num_scalar_prefetch=0,
            grid=(1,),                                 # single invocation: whole batch
            in_specs=[
                full((BS, H)),        # x (folded)
                full((BS, BS)),       # block-diag mask
                full((H, 3 * H)),     # fused Wqkv
                full((H, H)),         # Wo
                full((H, I)),         # W1
                full((I, H)),         # W2
                full((8, I)),         # packed biases / LN params
            ],
            out_specs=full((BS, SLAB_W)),              # one lane-dense slab
        ),
        out_shape=jax.ShapeDtypeStruct((BS, SLAB_W), jnp.float32),
        compiler_params=pltpu.CompilerParams(
            dimension_semantics=("arbitrary",)),
    )
    slab = fn(x_flat, mask_slab, wqkv, wo, w1, w2, vecs)

    out = slab[:, :H].reshape(B, S, H)
    # Extract per-batch diagonal blocks of the (BS, NH*BS) score region -> (B, NH, S, S).
    s5 = slab[:, H:H + SC_W].reshape(B, S, NH, B, S)
    scores = jnp.stack([s5[b, :, :, b, :] for b in range(B)], axis=0)  # (B, S, NH, S)
    scores = scores.transpose(0, 2, 1, 3)                              # (B, NH, S, S)
    return out, scores


def init_params(key):
    ks = jax.random.split(key, 8)
    std = 0.02
    wq = jax.random.normal(ks[0], (H, H), jnp.float32) * std
    wk = jax.random.normal(ks[1], (H, H), jnp.float32) * std
    wv = jax.random.normal(ks[2], (H, H), jnp.float32) * std
    wo = jax.random.normal(ks[3], (H, H), jnp.float32) * std
    w1 = jax.random.normal(ks[4], (H, I), jnp.float32) * std
    w2 = jax.random.normal(ks[5], (I, H), jnp.float32) * std
    zH = jnp.zeros((1, H), jnp.float32)
    zI = jnp.zeros((1, I), jnp.float32)
    oH = jnp.ones((1, H), jnp.float32)
    return (wq, zH, wk, zH, wv, zH,
            wo, zH, oH, zH,
            w1, zI, w2, zH, oH, zH)


def reference(x, mask, params):
    (wq, bq, wk, bk, wv, bv, wo, bo, g1, be1, w1, b1, w2, b2, g2, be2) = params
    q = x @ wq + bq
    k = x @ wk + bk
    v = x @ wv + bv
    qh = q.reshape(B, S, NH, HD).transpose(0, 2, 1, 3)
    kh = k.reshape(B, S, NH, HD).transpose(0, 2, 1, 3)
    vh = v.reshape(B, S, NH, HD).transpose(0, 2, 1, 3)
    scores = jnp.einsum("bhqd,bhkd->bhqk", qh, kh) / math.sqrt(HD)
    scores = scores + mask[:, None, :, :]
    p = jax.nn.softmax(scores, axis=-1)
    ctx = jnp.einsum("bhqk,bhkd->bhqd", p, vh).transpose(0, 2, 1, 3).reshape(B, S, H)
    att = ctx @ wo + bo
    slf = _layer_norm(att + x, g1, be1)
    inter = _gelu_ref(slf @ w1 + b1)
    out = inter @ w2 + b2
    out = _layer_norm(out + slf, g2, be2)
    return out, scores


if __name__ == "__main__":
    key = jax.random.PRNGKey(0)
    kx, kp = jax.random.split(key)
    x = jax.random.normal(kx, (B, S, H), jnp.float32)

    # additive attention mask: last 2 key positions of batch 1 are masked out
    valid = jnp.array([S, S - 2])
    key_pos = jnp.arange(S)[None, :]                      # (1, S)
    ext = jnp.where(key_pos < valid[:, None], 0.0, -10000.0).astype(jnp.float32)  # (B, S)
    mask = jnp.broadcast_to(ext[:, None, :], (B, S, S))   # broadcast over query positions

    params = init_params(kp)

    out, scores = encoder_layer(x, mask, params)
    out = jax.block_until_ready(out)
    scores = jax.block_until_ready(scores)

    ref_out, ref_scores = reference(x, mask, params)
    assert out.shape == (B, S, H) and scores.shape == (B, NH, S, S)
    assert jnp.allclose(out, ref_out, atol=1e-4, rtol=1e-4), "output mismatch"
    assert jnp.allclose(scores, ref_scores, atol=1e-4, rtol=1e-4), "scores mismatch"

    # TODO(synk): bf16 matmul inputs (keeping f32 accumulation / LN / softmax) would help
    # v6e/v7x further but stresses the 1e-4 reference tolerance, so kept f32 here.
    print("KERNEL_OK")
</pallas_src>

<mosaic_0001>
module attributes {stable_mosaic.version = 11 : i64} {
  func.func @encoder_layer_kernel(%arg0: i32, %arg1: memref<16x32xf32, #tpu.memory_space<vmem>>, %arg2: memref<16x16xf32, #tpu.memory_space<vmem>>, %arg3: memref<32x96xf32, #tpu.memory_space<vmem>>, %arg4: memref<32x32xf32, #tpu.memory_space<vmem>>, %arg5: memref<32x128xf32, #tpu.memory_space<vmem>>, %arg6: memref<128x32xf32, #tpu.memory_space<vmem>>, %arg7: memref<8x128xf32, #tpu.memory_space<vmem>>, %arg8: memref<16x128xf32, #tpu.memory_space<vmem>>) attributes {dimension_semantics = [#tpu.dimension_semantics<arbitrary>], iteration_bounds = array<i64: 1>, scalar_prefetch = 0 : i64, scratch_operands = 0 : i64, tpu.core_type = #tpu.core_type<tc>, window_params = [{pipeline_mode = #tpu.pipeline_mode<synchronous>, transform_indices = @transform_0, window_bounds = array<i64: 16, 32>}, {pipeline_mode = #tpu.pipeline_mode<synchronous>, transform_indices = @transform_1, window_bounds = array<i64: 16, 16>}, {pipeline_mode = #tpu.pipeline_mode<synchronous>, transform_indices = @transform_2, window_bounds = array<i64: 32, 96>}, {pipeline_mode = #tpu.pipeline_mode<synchronous>, transform_indices = @transform_3, window_bounds = array<i64: 32, 32>}, {pipeline_mode = #tpu.pipeline_mode<synchronous>, transform_indices = @transform_4, window_bounds = array<i64: 32, 128>}, {pipeline_mode = #tpu.pipeline_mode<synchronous>, transform_indices = @transform_5, window_bounds = array<i64: 128, 32>}, {pipeline_mode = #tpu.pipeline_mode<synchronous>, transform_indices = @transform_6, window_bounds = array<i64: 8, 128>}, {pipeline_mode = #tpu.pipeline_mode<synchronous>, transform_indices = @transform_7, window_bounds = array<i64: 16, 128>}]} {
    %c0 = arith.constant 0 : index
    %c0_0 = arith.constant 0 : index
    %0 = vector.load %arg1[%c0, %c0_0] : memref<16x32xf32, #tpu.memory_space<vmem>>, vector<16x32xf32>
    %c0_1 = arith.constant 0 : index
    %c0_2 = arith.constant 0 : index
    %1 = vector.load %arg2[%c0_1, %c0_2] : memref<16x16xf32, #tpu.memory_space<vmem>>, vector<16x16xf32>
    %c0_3 = arith.constant 0 : index
    %c0_4 = arith.constant 0 : index
    %2 = vector.load %arg7[%c0_3, %c0_4] : memref<8x128xf32, #tpu.memory_space<vmem>>, vector<8x128xf32>
    %3 = vector.extract_strided_slice %2 {offsets = [0, 0], sizes = [1, 96], strides = [1, 1]} : vector<8x128xf32> to vector<1x96xf32>
    %4 = vector.extract_strided_slice %2 {offsets = [1, 0], sizes = [1, 32], strides = [1, 1]} : vector<8x128xf32> to vector<1x32xf32>
    %5 = vector.extract_strided_slice %2 {offsets = [2, 0], sizes = [1, 32], strides = [1, 1]} : vector<8x128xf32> to vector<1x32xf32>
    %6 = vector.extract_strided_slice %2 {offsets = [3, 0], sizes = [1, 32], strides = [1, 1]} : vector<8x128xf32> to vector<1x32xf32>
    %7 = vector.extract_strided_slice %2 {offsets = [4, 0], sizes = [1, 128], strides = [1, 1]} : vector<8x128xf32> to vector<1x128xf32>
    %8 = vector.extract_strided_slice %2 {offsets = [5, 0], sizes = [1, 32], strides = [1, 1]} : vector<8x128xf32> to vector<1x32xf32>
    %9 = vector.extract_strided_slice %2 {offsets = [6, 0], sizes = [1, 32], strides = [1, 1]} : vector<8x128xf32> to vector<1x32xf32>
    %10 = vector.extract_strided_slice %2 {offsets = [7, 0], sizes = [1, 32], strides = [1, 1]} : vector<8x128xf32> to vector<1x32xf32>
    %c0_5 = arith.constant 0 : index
    %c0_6 = arith.constant 0 : index
    %11 = vector.load %arg3[%c0_5, %c0_6] : memref<32x96xf32, #tpu.memory_space<vmem>>, vector<32x96xf32>
    %cst = arith.constant dense<0.000000e+00> : vector<16x96xf32>
    %12 = tpu.matmul %0, %11, %cst {dimension_numbers = #tpu.dot_dimension_numbers<[1], [0], [0], [1], [0, 0, 1, 1], [], []>} : vector<16x32xf32>, vector<32x96xf32>, vector<16x96xf32> -> vector<16x96xf32>
    %13 = vector.broadcast %3 : vector<1x96xf32> to vector<16x96xf32>
    %14 = arith.addf %12, %13 : vector<16x96xf32>
    %15 = vector.extract_strided_slice %14 {offsets = [0, 0], sizes = [16, 8], strides = [1, 1]} : vector<16x96xf32> to vector<16x8xf32>
    %16 = vector.extract_strided_slice %14 {offsets = [0, 32], sizes = [16, 8], strides = [1, 1]} : vector<16x96xf32> to vector<16x8xf32>
    %17 = vector.extract_strided_slice %14 {offsets = [0, 64], sizes = [16, 8], strides = [1, 1]} : vector<16x96xf32> to vector<16x8xf32>
    %cst_7 = arith.constant dense<0.000000e+00> : vector<16x16xf32>
    %18 = tpu.matmul %15, %16, %cst_7 {dimension_numbers = #tpu.dot_dimension_numbers<[1], [1], [0], [0], [0, 0, 1, 0], [], []>} : vector<16x8xf32>, vector<16x8xf32>, vector<16x16xf32> -> vector<16x16xf32>
    %cst_8 = arith.constant 0.353553385 : f32
    %19 = vector.broadcast %cst_8 : f32 to vector<16x16xf32>
    %20 = arith.mulf %18, %19 : vector<16x16xf32>
    %21 = arith.addf %20, %1 : vector<16x16xf32>
    %cst_9 = arith.constant dense<0xFF800000> : vector<16xf32>
    %22 = vector.multi_reduction <maximumf>, %21, %cst_9 [1] : vector<16x16xf32> to vector<16xf32>
    %23 = vector.shape_cast %22 : vector<16xf32> to vector<16x1xf32>
    %24 = vector.broadcast %23 : vector<16x1xf32> to vector<16x16xf32>
    %25 = arith.subf %21, %24 : vector<16x16xf32>
    %26 = math.exp %25 : vector<16x16xf32>
    %cst_10 = arith.constant dense<0.000000e+00> : vector<16xf32>
    %27 = vector.multi_reduction <add>, %26, %cst_10 [1] : vector<16x16xf32> to vector<16xf32>
    %28 = vector.shape_cast %27 : vector<16xf32> to vector<16x1xf32>
    %29 = tpu.reciprocal %28 : vector<16x1xf32> -> vector<16x1xf32>
    %30 = vector.broadcast %29 : vector<16x1xf32> to vector<16x16xf32>
    %31 = arith.mulf %26, %30 : vector<16x16xf32>
    %cst_11 = arith.constant dense<0.000000e+00> : vector<16x8xf32>
    %32 = tpu.matmul %31, %17, %cst_11 {dimension_numbers = #tpu.dot_dimension_numbers<[1], [0], [0], [1], [0, 0, 1, 1], [], []>} : vector<16x16xf32>, vector<16x8xf32>, vector<16x8xf32> -> vector<16x8xf32>
    %33 = vector.extract_strided_slice %14 {offsets = [0, 8], sizes = [16, 8], strides = [1, 1]} : vector<16x96xf32> to vector<16x8xf32>
    %34 = vector.extract_strided_slice %14 {offsets = [0, 40], sizes = [16, 8], strides = [1, 1]} : vector<16x96xf32> to vector<16x8xf32>
    %35 = vector.extract_strided_slice %14 {offsets = [0, 72], sizes = [16, 8], strides = [1, 1]} : vector<16x96xf32> to vector<16x8xf32>
    %cst_12 = arith.constant dense<0.000000e+00> : vector<16x16xf32>
    %36 = tpu.matmul %33, %34, %cst_12 {dimension_numbers = #tpu.dot_dimension_numbers<[1], [1], [0], [0], [0, 0, 1, 0], [], []>} : vector<16x8xf32>, vector<16x8xf32>, vector<16x16xf32> -> vector<16x16xf32>
    %cst_13 = arith.constant 0.353553385 : f32
    %37 = vector.broadcast %cst_13 : f32 to vector<16x16xf32>
    %38 = arith.mulf %36, %37 : vector<16x16xf32>
    %39 = arith.addf %38, %1 : vector<16x16xf32>
    %cst_14 = arith.constant dense<0xFF800000> : vector<16xf32>
    %40 = vector.multi_reduction <maximumf>, %39, %cst_14 [1] : vector<16x16xf32> to vector<16xf32>
    %41 = vector.shape_cast %40 : vector<16xf32> to vector<16x1xf32>
    %42 = vector.broadcast %41 : vector<16x1xf32> to vector<16x16xf32>
    %43 = arith.subf %39, %42 : vector<16x16xf32>
    %44 = math.exp %43 : vector<16x16xf32>
    %cst_15 = arith.constant dense<0.000000e+00> : vector<16xf32>
    %45 = vector.multi_reduction <add>, %44, %cst_15 [1] : vector<16x16xf32> to vector<16xf32>
    %46 = vector.shape_cast %45 : vector<16xf32> to vector<16x1xf32>
    %47 = tpu.reciprocal %46 : vector<16x1xf32> -> vector<16x1xf32>
    %48 = vector.broadcast %47 : vector<16x1xf32> to vector<16x16xf32>
    %49 = arith.mulf %44, %48 : vector<16x16xf32>
    %cst_16 = arith.constant dense<0.000000e+00> : vector<16x8xf32>
    %50 = tpu.matmul %49, %35, %cst_16 {dimension_numbers = #tpu.dot_dimension_numbers<[1], [0], [0], [1], [0, 0, 1, 1], [], []>} : vector<16x16xf32>, vector<16x8xf32>, vector<16x8xf32> -> vector<16x8xf32>
    %51 = vector.extract_strided_slice %14 {offsets = [0, 16], sizes = [16, 8], strides = [1, 1]} : vector<16x96xf32> to vector<16x8xf32>
    %52 = vector.extract_strided_slice %14 {offsets = [0, 48], sizes = [16, 8], strides = [1, 1]} : vector<16x96xf32> to vector<16x8xf32>
    %53 = vector.extract_strided_slice %14 {offsets = [0, 80], sizes = [16, 8], strides = [1, 1]} : vector<16x96xf32> to vector<16x8xf32>
    %cst_17 = arith.constant dense<0.000000e+00> : vector<16x16xf32>
    %54 = tpu.matmul %51, %52, %cst_17 {dimension_numbers = #tpu.dot_dimension_numbers<[1], [1], [0], [0], [0, 0, 1, 0], [], []>} : vector<16x8xf32>, vector<16x8xf32>, vector<16x16xf32> -> vector<16x16xf32>
    %cst_18 = arith.constant 0.353553385 : f32
    %55 = vector.broadcast %cst_18 : f32 to vector<16x16xf32>
    %56 = arith.mulf %54, %55 : vector<16x16xf32>
    %57 = arith.addf %56, %1 : vector<16x16xf32>
    %cst_19 = arith.constant dense<0xFF800000> : vector<16xf32>
    %58 = vector.multi_reduction <maximumf>, %57, %cst_19 [1] : vector<16x16xf32> to vector<16xf32>
    %59 = vector.shape_cast %58 : vector<16xf32> to vector<16x1xf32>
    %60 = vector.broadcast %59 : vector<16x1xf32> to vector<16x16xf32>
    %61 = arith.subf %57, %60 : vector<16x16xf32>
    %62 = math.exp %61 : vector<16x16xf32>
    %cst_20 = arith.constant dense<0.000000e+00> : vector<16xf32>
    %63 = vector.multi_reduction <add>, %62, %cst_20 [1] : vector<16x16xf32> to vector<16xf32>
    %64 = vector.shape_cast %63 : vector<16xf32> to vector<16x1xf32>
    %65 = tpu.reciprocal %64 : vector<16x1xf32> -> vector<16x1xf32>
    %66 = vector.broadcast %65 : vector<16x1xf32> to vector<16x16xf32>
    %67 = arith.mulf %62, %66 : vector<16x16xf32>
    %cst_21 = arith.constant dense<0.000000e+00> : vector<16x8xf32>
    %68 = tpu.matmul %67, %53, %cst_21 {dimension_numbers = #tpu.dot_dimension_numbers<[1], [0], [0], [1], [0, 0, 1, 1], [], []>} : vector<16x16xf32>, vector<16x8xf32>, vector<16x8xf32> -> vector<16x8xf32>
    %69 = vector.extract_strided_slice %14 {offsets = [0, 24], sizes = [16, 8], strides = [1, 1]} : vector<16x96xf32> to vector<16x8xf32>
    %70 = vector.extract_strided_slice %14 {offsets = [0, 56], sizes = [16, 8], strides = [1, 1]} : vector<16x96xf32> to vector<16x8xf32>
    %71 = vector.extract_strided_slice %14 {offsets = [0, 88], sizes = [16, 8], strides = [1, 1]} : vector<16x96xf32> to vector<16x8xf32>
    %cst_22 = arith.constant dense<0.000000e+00> : vector<16x16xf32>
    %72 = tpu.matmul %69, %70, %cst_22 {dimension_numbers = #tpu.dot_dimension_numbers<[1], [1], [0], [0], [0, 0, 1, 0], [], []>} : vector<16x8xf32>, vector<16x8xf32>, vector<16x16xf32> -> vector<16x16xf32>
    %cst_23 = arith.constant 0.353553385 : f32
    %73 = vector.broadcast %cst_23 : f32 to vector<16x16xf32>
    %74 = arith.mulf %72, %73 : vector<16x16xf32>
    %75 = arith.addf %74, %1 : vector<16x16xf32>
    %cst_24 = arith.constant dense<0xFF800000> : vector<16xf32>
    %76 = vector.multi_reduction <maximumf>, %75, %cst_24 [1] : vector<16x16xf32> to vector<16xf32>
    %77 = vector.shape_cast %76 : vector<16xf32> to vector<16x1xf32>
    %78 = vector.broadcast %77 : vector<16x1xf32> to vector<16x16xf32>
    %79 = arith.subf %75, %78 : vector<16x16xf32>
    %80 = math.exp %79 : vector<16x16xf32>
    %cst_25 = arith.constant dense<0.000000e+00> : vector<16xf32>
    %81 = vector.multi_reduction <add>, %80, %cst_25 [1] : vector<16x16xf32> to vector<16xf32>
    %82 = vector.shape_cast %81 : vector<16xf32> to vector<16x1xf32>
    %83 = tpu.reciprocal %82 : vector<16x1xf32> -> vector<16x1xf32>
    %84 = vector.broadcast %83 : vector<16x1xf32> to vector<16x16xf32>
    %85 = arith.mulf %80, %84 : vector<16x16xf32>
    %cst_26 = arith.constant dense<0.000000e+00> : vector<16x8xf32>
    %86 = tpu.matmul %85, %71, %cst_26 {dimension_numbers = #tpu.dot_dimension_numbers<[1], [0], [0], [1], [0, 0, 1, 1], [], []>} : vector<16x16xf32>, vector<16x8xf32>, vector<16x8xf32> -> vector<16x8xf32>
    %87 = tpu.concatenate %32, %50, %68, %86 in 1 : vector<16x8xf32>, vector<16x8xf32>, vector<16x8xf32>, vector<16x8xf32> -> vector<16x32xf32>
    %88 = tpu.concatenate %21, %39, %57, %75 in 1 : vector<16x16xf32>, vector<16x16xf32>, vector<16x16xf32>, vector<16x16xf32> -> vector<16x64xf32>
    %c0_27 = arith.constant 0 : index
    %c0_28 = arith.constant 0 : index
    %89 = vector.load %arg4[%c0_27, %c0_28] : memref<32x32xf32, #tpu.memory_space<vmem>>, vector<32x32xf32>
    %cst_29 = arith.constant dense<0.000000e+00> : vector<16x32xf32>
    %90 = tpu.matmul %87, %89, %cst_29 {dimension_numbers = #tpu.dot_dimension_numbers<[1], [0], [0], [1], [0, 0, 1, 1], [], []>} : vector<16x32xf32>, vector<32x32xf32>, vector<16x32xf32> -> vector<16x32xf32>
    %91 = vector.broadcast %4 : vector<1x32xf32> to vector<16x32xf32>
    %92 = arith.addf %90, %91 : vector<16x32xf32>
    %93 = arith.addf %92, %0 : vector<16x32xf32>
    %cst_30 = arith.constant dense<0.000000e+00> : vector<16xf32>
    %94 = vector.multi_reduction <add>, %93, %cst_30 [1] : vector<16x32xf32> to vector<16xf32>
    %95 = vector.shape_cast %94 : vector<16xf32> to vector<16x1xf32>
    %cst_31 = arith.constant 3.200000e+01 : f32
    %96 = vector.broadcast %cst_31 : f32 to vector<16x1xf32>
    %97 = arith.divf %95, %96 : vector<16x1xf32>
    %98 = vector.broadcast %97 : vector<16x1xf32> to vector<16x32xf32>
    %99 = arith.subf %93, %98 : vector<16x32xf32>
    %100 = arith.mulf %99, %99 : vector<16x32xf32>
    %cst_32 = arith.constant dense<0.000000e+00> : vector<16xf32>
    %101 = vector.multi_reduction <add>, %100, %cst_32 [1] : vector<16x32xf32> to vector<16xf32>
    %102 = vector.shape_cast %101 : vector<16xf32> to vector<16x1xf32>
    %cst_33 = arith.constant 3.200000e+01 : f32
    %103 = vector.broadcast %cst_33 : f32 to vector<16x1xf32>
    %104 = arith.divf %102, %103 : vector<16x1xf32>
    %105 = vector.broadcast %97 : vector<16x1xf32> to vector<16x32xf32>
    %106 = arith.subf %93, %105 : vector<16x32xf32>
    %cst_34 = arith.constant 9.99999996E-13 : f32
    %107 = vector.broadcast %cst_34 : f32 to vector<16x1xf32>
    %108 = arith.addf %104, %107 : vector<16x1xf32>
    %109 = math.rsqrt %108 : vector<16x1xf32>
    %110 = vector.broadcast %109 : vector<16x1xf32> to vector<16x32xf32>
    %111 = arith.mulf %106, %110 : vector<16x32xf32>
    %112 = vector.broadcast %5 : vector<1x32xf32> to vector<16x32xf32>
    %113 = arith.mulf %111, %112 : vector<16x32xf32>
    %114 = vector.broadcast %6 : vector<1x32xf32> to vector<16x32xf32>
    %115 = arith.addf %113, %114 : vector<16x32xf32>
    %c0_35 = arith.constant 0 : index
    %c0_36 = arith.constant 0 : index
    %116 = vector.load %arg5[%c0_35, %c0_36] : memref<32x128xf32, #tpu.memory_space<vmem>>, vector<32x128xf32>
    %cst_37 = arith.constant dense<0.000000e+00> : vector<16x128xf32>
    %117 = tpu.matmul %115, %116, %cst_37 {dimension_numbers = #tpu.dot_dimension_numbers<[1], [0], [0], [1], [0, 0, 1, 1], [], []>} : vector<16x32xf32>, vector<32x128xf32>, vector<16x128xf32> -> vector<16x128xf32>
    %118 = vector.broadcast %7 : vector<1x128xf32> to vector<16x128xf32>
    %119 = arith.addf %117, %118 : vector<16x128xf32>
    %cst_38 = arith.constant 5.000000e-01 : f32
    %120 = vector.broadcast %cst_38 : f32 to vector<16x128xf32>
    %121 = arith.mulf %119, %120 : vector<16x128xf32>
    %cst_39 = arith.constant 0.707106769 : f32
    %122 = vector.broadcast %cst_39 : f32 to vector<16x128xf32>
    %123 = arith.mulf %119, %122 : vector<16x128xf32>
    %124 = math.absf %123 : vector<16x128xf32>
    %cst_40 = arith.constant 0.327591091 : f32
    %125 = vector.broadcast %cst_40 : f32 to vector<16x128xf32>
    %126 = arith.mulf %125, %124 : vector<16x128xf32>
    %cst_41 = arith.constant 1.000000e+00 : f32
    %127 = vector.broadcast %cst_41 : f32 to vector<16x128xf32>
    %128 = arith.addf %127, %126 : vector<16x128xf32>
    %cst_42 = arith.constant 1.000000e+00 : f32
    %129 = vector.broadcast %cst_42 : f32 to vector<16x128xf32>
    %130 = arith.divf %129, %128 : vector<16x128xf32>
    %cst_43 = arith.constant 1.06140542 : f32
    %131 = vector.broadcast %cst_43 : f32 to vector<16x128xf32>
    %132 = arith.mulf %131, %130 : vector<16x128xf32>
    %cst_44 = arith.constant -1.45315206 : f32
    %133 = vector.broadcast %cst_44 : f32 to vector<16x128xf32>
    %134 = arith.addf %132, %133 : vector<16x128xf32>
    %135 = arith.mulf %134, %130 : vector<16x128xf32>
    %cst_45 = arith.constant 1.42141378 : f32
    %136 = vector.broadcast %cst_45 : f32 to vector<16x128xf32>
    %137 = arith.addf %135, %136 : vector<16x128xf32>
    %138 = arith.mulf %137, %130 : vector<16x128xf32>
    %cst_46 = arith.constant -0.284496725 : f32
    %139 = vector.broadcast %cst_46 : f32 to vector<16x128xf32>
    %140 = arith.addf %138, %139 : vector<16x128xf32>
    %141 = arith.mulf %140, %130 : vector<16x128xf32>
    %cst_47 = arith.constant 0.254829586 : f32
    %142 = vector.broadcast %cst_47 : f32 to vector<16x128xf32>
    %143 = arith.addf %141, %142 : vector<16x128xf32>
    %144 = arith.mulf %143, %130 : vector<16x128xf32>
    %cst_48 = arith.constant 0.000000e+00 : f32
    %145 = vector.broadcast %cst_48 : f32 to vector<16x128xf32>
    %146 = arith.subf %145, %124 : vector<16x128xf32>
    %147 = arith.mulf %146, %124 : vector<16x128xf32>
    %148 = math.exp %147 : vector<16x128xf32>
    %149 = arith.mulf %144, %148 : vector<16x128xf32>
    %cst_49 = arith.constant 1.000000e+00 : f32
    %150 = vector.broadcast %cst_49 : f32 to vector<16x128xf32>
    %151 = arith.subf %150, %149 : vector<16x128xf32>
    %cst_50 = arith.constant 0.000000e+00 : f32
    %152 = vector.broadcast %cst_50 : f32 to vector<16x128xf32>
    %153 = arith.cmpf oge, %123, %152 : vector<16x128xf32>
    %cst_51 = arith.constant 0.000000e+00 : f32
    %154 = vector.broadcast %cst_51 : f32 to vector<16x128xf32>
    %155 = arith.subf %154, %151 : vector<16x128xf32>
    %156 = arith.select %153, %151, %155 : vector<16x128xi1>, vector<16x128xf32>
    %cst_52 = arith.constant 1.000000e+00 : f32
    %157 = vector.broadcast %cst_52 : f32 to vector<16x128xf32>
    %158 = arith.addf %157, %156 : vector<16x128xf32>
    %159 = arith.mulf %121, %158 : vector<16x128xf32>
    %c0_53 = arith.constant 0 : index
    %c0_54 = arith.constant 0 : index
    %160 = vector.load %arg6[%c0_53, %c0_54] : memref<128x32xf32, #tpu.memory_space<vmem>>, vector<128x32xf32>
    %cst_55 = arith.constant dense<0.000000e+00> : vector<16x32xf32>
    %161 = tpu.matmul %159, %160, %cst_55 {dimension_numbers = #tpu.dot_dimension_numbers<[1], [0], [0], [1], [0, 0, 1, 1], [], []>} : vector<16x128xf32>, vector<128x32xf32>, vector<16x32xf32> -> vector<16x32xf32>
    %162 = vector.broadcast %8 : vector<1x32xf32> to vector<16x32xf32>
    %163 = arith.addf %161, %162 : vector<16x32xf32>
    %164 = arith.addf %163, %115 : vector<16x32xf32>
    %cst_56 = arith.constant dense<0.000000e+00> : vector<16xf32>
    %165 = vector.multi_reduction <add>, %164, %cst_56 [1] : vector<16x32xf32> to vector<16xf32>
    %166 = vector.shape_cast %165 : vector<16xf32> to vector<16x1xf32>
    %cst_57 = arith.constant 3.200000e+01 : f32
    %167 = vector.broadcast %cst_57 : f32 to vector<16x1xf32>
    %168 = arith.divf %166, %167 : vector<16x1xf32>
    %169 = vector.broadcast %168 : vector<16x1xf32> to vector<16x32xf32>
    %170 = arith.subf %164, %169 : vector<16x32xf32>
    %171 = arith.mulf %170, %170 : vector<16x32xf32>
    %cst_58 = arith.constant dense<0.000000e+00> : vector<16xf32>
    %172 = vector.multi_reduction <add>, %171, %cst_58 [1] : vector<16x32xf32> to vector<16xf32>
    %173 = vector.shape_cast %172 : vector<16xf32> to vector<16x1xf32>
    %cst_59 = arith.constant 3.200000e+01 : f32
    %174 = vector.broadcast %cst_59 : f32 to vector<16x1xf32>
    %175 = arith.divf %173, %174 : vector<16x1xf32>
    %176 = vector.broadcast %168 : vector<16x1xf32> to vector<16x32xf32>
    %177 = arith.subf %164, %176 : vector<16x32xf32>
    %cst_60 = arith.constant 9.99999996E-13 : f32
    %178 = vector.broadcast %cst_60 : f32 to vector<16x1xf32>
    %179 = arith.addf %175, %178 : vector<16x1xf32>
    %180 = math.rsqrt %179 : vector<16x1xf32>
    %181 = vector.broadcast %180 : vector<16x1xf32> to vector<16x32xf32>
    %182 = arith.mulf %177, %181 : vector<16x32xf32>
    %183 = vector.broadcast %9 : vector<1x32xf32> to vector<16x32xf32>
    %184 = arith.mulf %182, %183 : vector<16x32xf32>
    %185 = vector.broadcast %10 : vector<1x32xf32> to vector<16x32xf32>
    %186 = arith.addf %184, %185 : vector<16x32xf32>
    %cst_61 = arith.constant 0.000000e+00 : f32
    %187 = vector.broadcast %cst_61 : f32 to vector<16x32xf32>
    %188 = tpu.concatenate %186, %88, %187 in 1 : vector<16x32xf32>, vector<16x64xf32>, vector<16x32xf32> -> vector<16x128xf32>
    %c0_62 = arith.constant 0 : index
    %c0_63 = arith.constant 0 : index
    %189 = vector.load %arg8[%c0_62, %c0_63] : memref<16x128xf32, #tpu.memory_space<vmem>>, vector<16x128xf32>
    tpu.vector_store %arg8[%c0_62, %c0_63], %188 {strides = array<i32>} : memref<16x128xf32, #tpu.memory_space<vmem>>, vector<16x128xf32>,
    return
  }
  func.func @transform_0(%arg0: i32) -> (i32, i32) {
    %c0_i32 = arith.constant 0 : i32
    %c0_i32_0 = arith.constant 0 : i32
    %c0_i32_1 = arith.constant 0 : i32
    return %c0_i32, %c0_i32_0 : i32, i32
  }
  func.func @transform_1(%arg0: i32) -> (i32, i32) {
    %c0_i32 = arith.constant 0 : i32
    %c0_i32_0 = arith.constant 0 : i32
    %c0_i32_1 = arith.constant 0 : i32
    return %c0_i32, %c0_i32_0 : i32, i32
  }
  func.func @transform_2(%arg0: i32) -> (i32, i32) {
    %c0_i32 = arith.constant 0 : i32
    %c0_i32_0 = arith.constant 0 : i32
    %c0_i32_1 = arith.constant 0 : i32
    return %c0_i32, %c0_i32_0 : i32, i32
  }
  func.func @transform_3(%arg0: i32) -> (i32, i32) {
    %c0_i32 = arith.constant 0 : i32
    %c0_i32_0 = arith.constant 0 : i32
    %c0_i32_1 = arith.constant 0 : i32
    return %c0_i32, %c0_i32_0 : i32, i32
  }
  func.func @transform_4(%arg0: i32) -> (i32, i32) {
    %c0_i32 = arith.constant 0 : i32
    %c0_i32_0 = arith.constant 0 : i32
    %c0_i32_1 = arith.constant 0 : i32
    return %c0_i32, %c0_i32_0 : i32, i32
  }
  func.func @transform_5(%arg0: i32) -> (i32, i32) {
    %c0_i32 = arith.constant 0 : i32
    %c0_i32_0 = arith.constant 0 : i32
    %c0_i32_1 = arith.constant 0 : i32
    return %c0_i32, %c0_i32_0 : i32, i32
  }
  func.func @transform_6(%arg0: i32) -> (i32, i32) {
    %c0_i32 = arith.constant 0 : i32
    %c0_i32_0 = arith.constant 0 : i32
    %c0_i32_1 = arith.constant 0 : i32
    return %c0_i32, %c0_i32_0 : i32, i32
  }
  func.func @transform_7(%arg0: i32) -> (i32, i32) {
    %c0_i32 = arith.constant 0 : i32
    %c0_i32_0 = arith.constant 0 : i32
    %c0_i32_1 = arith.constant 0 : i32
    return %c0_i32, %c0_i32_0 : i32, i32
  }
}

</mosaic_0001>

<bundles_post_ra>
// kernel: tpu_custom_call.1
= control target key start
LH: loop header
LB: loop body
LE: loop exit
PB: predicated region body
PF: predicated region fallthrough
CT: control target
= control target key end

     0   :  { %vm40_vm0 = vcmask 261120   ;;  %s2272_s0 = inlined_call_operand.vmem [shape: f32[16,32], index: 0, kind: input, shape index: {}]   ;;  %s2273_s1 = inlined_call_operand.vmem [shape: f32[16,16], index: 1, kind: input, shape index: {}]   ;;  %s2274_s2 = inlined_call_operand.vmem [shape: f32[32,96], index: 2, kind: input, shape index: {}]   ;;  %s2275_s3 = inlined_call_operand.vmem [shape: f32[32,32], index: 3, kind: input, shape index: {}]   ;;  %s2276_s4 = inlined_call_operand.vmem [shape: f32[32,128], index: 4, kind: input, shape index: {}]   ;;  %s2277_s5 = inlined_call_operand.vmem [shape: f32[128,32], index: 5, kind: input, shape index: {}]   ;;  %s2278_s6 = inlined_call_operand.vmem [shape: f32[8,128], index: 6, kind: input, shape index: {}]   ;;  %s2279_s7 = inlined_call_operand.hbm [shape: f32[16,128], index: 7, kind: output, shape index: {}]  }
   0x1   :  { %v32_v0 = vld [vmem:[%s2274_s2] sm:$0xff]  ;;  %v33_v1 = vld [vmem:[%s2274_s2 + $0x8] sm:$0xff]  ;;  %v34_v2 = vld [vmem:[%s2274_s2 + $0x10] sm:$0xff] }
   0x2   :  { %v1661_v3 = vpack.c.bf16 %v33_v1, %v32_v0  ;;  %v35_v4 = vld [vmem:[%s2274_s2 + $0x18] sm:$0xff]  ;;  %v1958_v5 = vld [vmem:[%s2272_s0] sm:$0xff] }
   0x3   :  { %v1665_v6 = vpack.c.bf16 %v35_v4, %v34_v2  ;;  %1545 = vmatprep.mubr.msk.f32.mxu1 %vm40_vm0, %v1958_v5 }
   0x4   :  { %12 = vsyncpa [#allocation3], 0  ;;  %1662 = vmatprep.subr.bf16.mxu1 %v1661_v3  ;;  %v1965_v7 = vld [vmem:[%s2272_s0 + $0x8] sm:$0xff]  ;;  %v36_v8 = vlaneseq  ;;  %v1975_v11 = vld [vmem:[%s2278_s6] sm:$0xff]  ;;  %vm128_vm1 = vcmask 64512   ;;  %s1886_s0 = smov 80  }
   0x5   :  { %1664 = vmatpush3.bf16.msra.mxu1 %v1661_v3  ;;  %s1887_s6 = smov 96   ;;  %s1888_s14 = smov 120   ;;  %vm1997_vm2 = vmpackc.low %vm128_vm1, %vm128_vm1  ;;  %v2022_v42 = vld [vmem:[%s2273_s1 + $0x8] sm:$0xff]  ;;  %v2027_v44 = vld [vmem:[%s2273_s1] sm:$0xff]  ;;  %vm216_vm3 = vcmask 130048   ;;  %vm966_vm4 = vcmask 195584  }
   0x6   :  { %1666 = vmatprep.subr.bf16.mxu1 %v1665_v6  ;;  %v1969_v9 = vshrl.u32 %v36_v8, 7  ;;  %s1889_s15 = smov 88   ;;  %s1890_s16 = smov 112   ;;  %vm997_vm7 = vcmask 392192   ;;  %vm1418_vm8 = vcmask 785408  }
   0x7   :  { %s1891_s1 = smov 72   ;;  %s1892_s21 = smov 104  }
   0x8   :  { %v38_v10 = vsub.s32 0, %v1969_v9  ;;  %s1893_s22 = smov 48   ;;  %s1894_s23 = smov 56  }
   0x9   :  { %1668 = vmatpush3.bf16.msra.mxu1 %v1665_v6  ;;  %s1895_s24 = smov 40   ;;  %s1896_s25 = smov 64  }
   0xa   :  { %v39_v12 = vrot.slane %v1975_v11, %v38_v10  ;;  %s1897_s11 = smov 8   ;;  %s1898_s12 = smov 16  }
   0xc   :  { %1546 = vmatmul.mubr.msk.f32.vlgmr.msra.gmra.mrb[0].mxu1 %vm40_vm0, %v1965_v7 }
  0xdf   :  { %v1547_v13 = vpop.f32.mrb[0].mxu1 }
  0xe0   :  { %v1978_v14 = vadd.f32 %v1547_v13, %v39_v12  ;;  %v113_v15 = vpop.f32.mrb[1].mxu1 }
  0xe1   :  { %v1980_v16 = vadd.f32 %v113_v15, %v39_v12 }
  0xe3   :  { %1552 = vmatprep.mubr.msk.f32.mxu1 %vm128_vm1, %v1980_v16  ;;  %v1986_v17 = vpack.i.bf16 %v1978_v14, %v1980_v16 }
  0xe5   :  { %1785 = vrot.lane.b32.xlu1 %v1986_v17, %s1886_s0  ;;  %1775 = vrot.lane.b32.xlu0 %v1986_v17, %s1887_s6 }
  0xe9   :  { %326 = vrot.lane.b32.xlu1 %v1980_v16, %s1888_s14  ;;  %1780 = vrot.lane.b32.xlu0 %v1986_v17, %s1889_s15 }
  0xed   :  { %530 = vrot.lane.b32.xlu1 %v1980_v16, %s1890_s16  ;;  %328 = vrot.lane.b32.xlu0 %v1978_v14, %s1888_s14 }
  0xf1   :  { %532 = vrot.lane.b32.xlu0 %v1978_v14, %s1890_s16 }
 0x157   :  { %v1776_v18 = vpop.permute.xlu0 %1775  ;;  %v1786_v26 = vpop.permute.xlu1 %1785 }
 0x158   :  { %v1778_v19 = vunpack.i.h.bf16 %v1776_v18  ;;  %v1777_v20 = vunpack.i.l.bf16 %v1776_v18  ;;  %v1788_v28 = vunpack.i.h.bf16 %v1786_v26  ;;  %v1787_v29 = vunpack.i.l.bf16 %v1786_v26 }
 0x15a   :  { %v1669_v22 = vpack.c.bf16 %v1778_v19, %v1777_v20  ;;  %v1689_v30 = vpack.c.bf16 %v1788_v28, %v1787_v29 }
 0x15b   :  { %v1781_v23 = vpop.permute.xlu0 %1780  ;;  %v327_v31 = vpop.permute.xlu1 %326 }
 0x15c   :  { %v1783_v24 = vunpack.i.h.bf16 %v1781_v23  ;;  %v1782_v25 = vunpack.i.l.bf16 %v1781_v23  ;;  %1671 = vmatprep.subr.msk.bf16.mxu1 %vm1997_vm2, %v1669_v22 }
 0x15d   :  { %1674 = vmatpush3.bf16.xpose.msk.msra.mxu1 %vm1997_vm2, %v1669_v22 }
 0x15e   :  { %v1679_v27 = vpack.c.bf16 %v1783_v24, %v1782_v25 }
 0x15f   :  { %v329_v32 = vpop.permute.xlu0 %328  ;;  %v531_v33 = vpop.permute.xlu1 %530 }
 0x160   :  { %1681 = vmatprep.subr.msk.bf16.mxu1 %vm1997_vm2, %v1679_v27 }
 0x163   :  { %v533_v34 = vpop.permute.xlu0 %532 }
 0x164   :  { %1553 = vmatmul.mubr.msk.f32.vlgmr.msra.gmra.mrb[2].mxu1 %vm128_vm1, %v1978_v14 }
 0x165   :  { %1684 = vmatpush3.bf16.xpose.msk.msra.mxu1 %vm1997_vm2, %v1679_v27  ;;  %1566 = vmatprep.mubr.msk.f32.mxu1 %vm128_vm1, %v327_v31 }
 0x166   :  { %1691 = vmatprep.subr.msk.bf16.mxu1 %vm1997_vm2, %v1689_v30 }
 0x16c   :  { %1567 = vmatmul.mubr.msk.f32.vlgmr.msra.gmra.mrb[4].mxu1 %vm128_vm1, %v329_v32 }
 0x16d   :  { %1694 = vmatpush3.bf16.xpose.msk.msra.mxu1 %vm1997_vm2, %v1689_v30  ;;  %1580 = vmatprep.mubr.msk.f32.mxu1 %vm128_vm1, %v531_v33 }
 0x174   :  { %1581 = vmatmul.mubr.msk.f32.vlgmr.msra.gmra.mrb[6].mxu1 %vm128_vm1, %v533_v34 }
 0x237   :  { %v1554_v35 = vpop.f32.mrb[2].mxu1 }
 0x238   :  { %v203_v36 = vpop.f32.mrb[3].mxu1  ;;  %v213_v60 = vmul.f32 0.35355338, %v1554_v35 }
 0x239   :  { %v212_v59 = vmul.f32 0.35355338, %v203_v36 }
 0x23a   :  { %v2052_v63 = vadd.f32 %v213_v60, %v2022_v42 }
 0x23b   :  { %v2049_v61 = vadd.f32 %v212_v59, %v2027_v44 }
 0x23c   :  { %v220_v4 = vsel %vm216_vm3, %v2052_v63, -inf }
 0x23d   :  { %v217_v2 = vsel %vm216_vm3, %v2049_v61, -inf }
 0x23f   :  { %v1568_v37 = vpop.f32.mrb[4].mxu1 }
 0x240   :  { %v408_v38 = vpop.f32.mrb[5].mxu1  ;;  %v418_v62 = vmul.f32 0.35355338, %v1568_v37 }
 0x241   :  { %v417_v0 = vmul.f32 0.35355338, %v408_v38 }
 0x242   :  { %v2055_v1 = vadd.f32 %v418_v62, %v2022_v42 }
 0x243   :  { %v2060_v3 = vadd.f32 %v417_v0, %v2027_v44 }
 0x244   :  { %v424_v6 = vsel %vm216_vm3, %v2055_v1, -inf }
 0x245   :  { %v421_v8 = vsel %vm216_vm3, %v2060_v3, -inf }
 0x247   :  { %v1582_v39 = vpop.f32.mrb[6].mxu1 }
 0x248   :  { %v622_v40 = vmul.f32 0.35355338, %v1582_v39  ;;  %v612_v41 = vpop.f32.mrb[7].mxu1 }
 0x249   :  { %v621_v43 = vmul.f32 0.35355338, %v612_v41 }
 0x24a   :  { %v2030_v45 = vadd.f32 %v622_v40, %v2022_v42 }
 0x24b   :  { %v2033_v46 = vadd.f32 %v621_v43, %v2027_v44 }
 0x24c   :  { %v628_v47 = vsel %vm216_vm3, %v2030_v45, -inf }
 0x24d   :  { %629 = vmax.xlane.f32.xlu0 %v628_v47  ;;  %v625_v48 = vsel %vm216_vm3, %v2033_v46, -inf }
 0x24e   :  { %626 = vmax.xlane.f32.xlu1 %v625_v48 }
 0x2da   :  { %v630_v49 = vpop.xlane.xlu0 %629 }
 0x2db   :  { %v632_v50 = vsub.f32 %v2030_v45, %v630_v49  ;;  %v627_v51 = vpop.xlane.xlu1 %626 }
 0x2dc   :  { %v631_v52 = vsub.f32 %v2033_v46, %v627_v51 }
 0x2dd   :  { %v635_v53 = vmul.f32 1.442695, %v632_v50 }
 0x2de   :  { %v633_v54 = vmul.f32 1.442695, %v631_v52 }
 0x2df   :  { %1814 = vpow2.f32 %v635_v53 }
 0x2e0   :  { %1816 = vpow2.f32 %v633_v54 }
 0x2e9   :  { %v1815_v55 = vpop.eup %1814 }
 0x2ea   :  { %v1817_v56 = vpop.eup %1816  ;;  %v640_v57 = vsel %vm216_vm3, %v1815_v55, 0.0 }
 0x2eb   :  { %641 = vadd.xlane.f32.xlu1 %v640_v57  ;;  %v637_v58 = vsel %vm216_vm3, %v1817_v56, 0.0 }
 0x2ec   :  { %638 = vadd.xlane.f32.xlu0 %v637_v58 }
 0x2fc   :  { %1795 = vrot.lane.b32.xlu1 %v1986_v17, %s1891_s1 }
 0x300   :  { %734 = vrot.lane.b32.xlu1 %v1980_v16, %s1892_s21 }
 0x302   :  { %1790 = vrot.lane.b32.xlu0 %v1986_v17, %s1893_s22 }
 0x306   :  { %736 = vrot.lane.b32.xlu0 %v1978_v14, %s1892_s21 }
 0x324   :  { %218 = vmax.xlane.f32.xlu1 %v217_v2 }
 0x325   :  { %221 = vmax.xlane.f32.xlu0 %v220_v4 }
 0x328   :  { %425 = vmax.xlane.f32.xlu1 %v424_v6 }
 0x329   :  { %422 = vmax.xlane.f32.xlu0 %v421_v8 }
 0x378   :  { %v642_v10 = vpop.xlane.xlu1 %641 }
 0x379   :  { %1818 = vrcp.f32 %v642_v10  ;;  %v639_v12 = vpop.xlane.xlu0 %638 }
 0x37a   :  { %1820 = vrcp.f32 %v639_v12 }
 0x37c   :  { %v1796_v13 = vpop.permute.xlu1 %1795 }
 0x37d   :  { %v1791_v14 = vpop.permute.xlu0 %1790  ;;  %v1798_v15 = vunpack.i.h.bf16 %v1796_v13  ;;  %v1797_v16 = vunpack.i.l.bf16 %v1796_v13 }
 0x37e   :  { %v1793_v18 = vunpack.i.h.bf16 %v1791_v14  ;;  %v1792_v19 = vunpack.i.l.bf16 %v1791_v14 }
 0x37f   :  { %v1699_v22 = vpack.c.bf16 %v1798_v15, %v1797_v16 }
 0x380   :  { %v1695_v20 = vpack.c.bf16 %v1793_v18, %v1792_v19  ;;  %v735_v27 = vpop.permute.xlu1 %734 }
 0x381   :  { %v737_v28 = vpop.permute.xlu0 %736 }
 0x382   :  { %1696 = vmatprep.subr.bf16.mxu1 %v1695_v20 }
 0x383   :  { %v1819_v23 = vpop.eup %1818  ;;  %1698 = vmatpush3.bf16.msra.mxu1 %v1695_v20 }
 0x384   :  { %v1821_v24 = vpop.eup %1820  ;;  %1701 = vmatprep.subr.msk.bf16.mxu1 %vm1997_vm2, %v1699_v22  ;;  %v646_v26 = vmul.f32 %v1819_v23, %v1815_v55 }
 0x385   :  { %v645_v25 = vmul.f32 %v1821_v24, %v1817_v56 }
 0x387   :  { %1587 = vmatprep.mubr.msk.f32.mxu1 %vm216_vm3, %v645_v25 }
 0x388   :  { %1588 = vmatmul.mubr.msk.f32.vlgmr.msra.gmra.mrb[8].mxu1 %vm216_vm3, %v646_v26 }
 0x389   :  { %1594 = vmatprep.mubr.msk.f32.mxu1 %vm128_vm1, %v735_v27 }
 0x38c   :  { %1704 = vmatpush3.bf16.xpose.msk.msra.mxu1 %vm1997_vm2, %v1699_v22 }
 0x393   :  { %1595 = vmatmul.mubr.msk.f32.vlgmr.msra.gmra.mrb[10].mxu1 %vm128_vm1, %v737_v28 }
 0x3b1   :  { %v219_v29 = vpop.xlane.xlu1 %218 }
 0x3b2   :  { %v222_v30 = vpop.xlane.xlu0 %221  ;;  %v223_v32 = vsub.f32 %v2049_v61, %v219_v29 }
 0x3b3   :  { %v224_v31 = vsub.f32 %v2052_v63, %v222_v30 }
 0x3b4   :  { %v225_v21 = vmul.f32 1.442695, %v223_v32 }
 0x3b5   :  { %v426_v33 = vpop.xlane.xlu1 %425  ;;  %v227_v37 = vmul.f32 1.442695, %v224_v31 }
 0x3b6   :  { %v423_v35 = vpop.xlane.xlu0 %422  ;;  %v428_v38 = vsub.f32 %v2055_v1, %v426_v33 }
 0x3b7   :  { %v427_v39 = vsub.f32 %v2060_v3, %v423_v35  ;;  %1822 = vpow2.f32 %v227_v37 }
 0x3b8   :  { %v431_v40 = vmul.f32 1.442695, %v428_v38  ;;  %1824 = vpow2.f32 %v225_v21 }
 0x3b9   :  { %v429_v41 = vmul.f32 1.442695, %v427_v39 }
 0x3ba   :  { %1826 = vpow2.f32 %v431_v40 }
 0x3bb   :  { %1828 = vpow2.f32 %v429_v41 }
 0x3c1   :  { %v2092_v53 = vpop.eup %1822 }
 0x3c2   :  { %v1825_v55 = vpop.eup %1824  ;;  %v232_v56 = vsel %vm216_vm3, %v2092_v53, 0.0 }
 0x3c4   :  { %v2098_v57 = vpop.eup %1826 }
 0x3c5   :  { %v436_v58 = vsel %vm216_vm3, %v2098_v57, 0.0 }
 0x45b   :  { %v2078_v34 = vpop.f32.mrb[8].mxu1 }
 0x45c   :  { %v2080_v36 = vpop.f32.mrb[9].mxu1 }
 0x466   :  { %v1596_v43 = vpop.f32.mrb[10].mxu1 }
 0x467   :  { %v826_v47 = vmul.f32 0.35355338, %v1596_v43  ;;  %v816_v48 = vpop.f32.mrb[11].mxu1 }
 0x468   :  { %v825_v49 = vmul.f32 0.35355338, %v816_v48 }
 0x469   :  { %v2085_v50 = vadd.f32 %v826_v47, %v2022_v42  ;;  %v229_v42 = vsel %vm216_vm3, %v1825_v55, 0.0 }
 0x46a   :  { %v2088_v51 = vadd.f32 %v825_v49, %v2027_v44  ;;  %v1829_v44 = vpop.eup %1828 }
 0x46b   :  { %v832_v52 = vsel %vm216_vm3, %v2085_v50, -inf  ;;  %v433_v59 = vsel %vm216_vm3, %v1829_v44, 0.0 }
 0x46c   :  { %833 = vmax.xlane.f32.xlu1 %v832_v52  ;;  %v829_v54 = vsel %vm216_vm3, %v2088_v51, -inf  ;;  %v1000_v52 = vld [vmem:[%s2275_s3] sm:$0xff] }
 0x46d   :  { %830 = vmax.xlane.f32.xlu0 %v829_v54 }
 0x470   :  { %233 = vadd.xlane.f32.xlu1 %v232_v56  ;;  %v1003_v56 = vld [vmem:[%s2275_s3 + $0x18] sm:$0xff] }
 0x471   :  { %230 = vadd.xlane.f32.xlu0 %v229_v42 }
 0x474   :  { %437 = vadd.xlane.f32.xlu1 %v436_v58 }
 0x475   :  { %434 = vadd.xlane.f32.xlu0 %v433_v59 }
 0x4f9   :  { %v834_v60 = vpop.xlane.xlu1 %833 }
 0x4fa   :  { %v836_v62 = vsub.f32 %v2085_v50, %v834_v60  ;;  %v831_v0 = vpop.xlane.xlu0 %830 }
 0x4fb   :  { %v835_v2 = vsub.f32 %v2088_v51, %v831_v0 }
 0x4fc   :  { %v839_v4 = vmul.f32 1.442695, %v836_v62 }
 0x4fd   :  { %v837_v6 = vmul.f32 1.442695, %v835_v2  ;;  %v234_v18 = vpop.xlane.xlu1 %233 }
 0x4fe   :  { %1830 = vpow2.f32 %v839_v4  ;;  %v231_v8 = vpop.xlane.xlu0 %230 }
 0x4ff   :  { %1832 = vpow2.f32 %v837_v6 }
 0x500   :  { %1834 = vrcp.f32 %v231_v8 }
 0x501   :  { %v438_v19 = vpop.xlane.xlu1 %437  ;;  %1836 = vrcp.f32 %v234_v18 }
 0x502   :  { %v435_v20 = vpop.xlane.xlu0 %434 }
 0x503   :  { %1838 = vrcp.f32 %v435_v20 }
 0x504   :  { %1840 = vrcp.f32 %v438_v19 }
 0x508   :  { %v1831_v10 = vpop.eup %1830 }
 0x509   :  { %v1833_v12 = vpop.eup %1832  ;;  %v844_v13 = vsel %vm216_vm3, %v1831_v10, 0.0 }
 0x50a   :  { %845 = vadd.xlane.f32.xlu1 %v844_v13  ;;  %v841_v14 = vsel %vm216_vm3, %v1833_v12, 0.0  ;;  %v1835_v15 = vpop.eup %1834 }
 0x50b   :  { %842 = vadd.xlane.f32.xlu0 %v841_v14  ;;  %v237_v16 = vmul.f32 %v1835_v15, %v1825_v55  ;;  %v1837_v32 = vpop.eup %1836  ;;  %v1002_v55 = vld [vmem:[%s2275_s3 + $0x10] sm:$0xff] }
 0x50c   :  { %v238_v38 = vmul.f32 %v1837_v32, %v2092_v53  ;;  %v1001_v53 = vld [vmem:[%s2275_s3 + $0x8] sm:$0xff]  ;;  %s1899_s3 = smov 24  }
 0x50d   :  { %1559 = vmatprep.mubr.msk.f32.mxu0 %vm216_vm3, %v237_v16  ;;  %v1709_v54 = vpack.c.bf16 %v1001_v53, %v1000_v52  ;;  %v1006_v16 = vsub.s32 1, %v1969_v9 }
 0x50f   :  { %v1007_v18 = vrot.slane %v1975_v11, %v1006_v16  ;;  %v1280_v16 = vld [vmem:[%s2277_s5 + $0x38] sm:$0xff] }
 0x51b   :  { %1805 = vrot.lane.b32.xlu1 %v1986_v17, %s1894_s23 }
 0x51f   :  { %1810 = vrot.lane.b32.xlu1 %v1986_v17, %s1895_s24 }
 0x521   :  { %1800 = vrot.lane.b32.xlu0 %v1986_v17, %s1896_s25  ;;  %v1839_v17 = vpop.eup %1838 }
 0x522   :  { %v1841_v21 = vpop.eup %1840  ;;  %v441_v39 = vmul.f32 %v1839_v17, %v1829_v44 }
 0x523   :  { %v442_v43 = vmul.f32 %v1841_v21, %v2098_v57  ;;  %v1713_v57 = vpack.c.bf16 %v1003_v56, %v1002_v55  ;;  %v1126_v55 = vsub.s32 3, %v1969_v9 }
 0x597   :  { %v846_v22 = vpop.xlane.xlu1 %845 }
 0x598   :  { %v843_v23 = vpop.xlane.xlu0 %842 }
 0x599   :  { %1842 = vrcp.f32 %v843_v23 }
 0x59a   :  { %1844 = vrcp.f32 %v846_v22 }
 0x59b   :  { %v1806_v24 = vpop.permute.xlu1 %1805 }
 0x59c   :  { %v1801_v25 = vpop.permute.xlu0 %1800  ;;  %v1808_v26 = vunpack.i.h.bf16 %v1806_v24  ;;  %v1807_v27 = vunpack.i.l.bf16 %v1806_v24 }
 0x59d   :  { %v1803_v28 = vunpack.i.h.bf16 %v1801_v25  ;;  %v1802_v29 = vunpack.i.l.bf16 %v1801_v25 }
 0x59e   :  { %v1685_v33 = vpack.c.bf16 %v1808_v26, %v1807_v27 }
 0x59f   :  { %v1811_v30 = vpop.permute.xlu1 %1810  ;;  %v1675_v31 = vpack.c.bf16 %v1803_v28, %v1802_v29 }
 0x5a0   :  { %v1813_v35 = vunpack.i.h.bf16 %v1811_v30  ;;  %v1812_v37 = vunpack.i.l.bf16 %v1811_v30 }
 0x5a1   :  { %1676 = vmatprep.subr.bf16.mxu0 %v1675_v31 }
 0x5a2   :  { %1678 = vmatpush3.bf16.msra.mxu0 %v1675_v31  ;;  %v1705_v41 = vpack.c.bf16 %v1813_v35, %v1812_v37 }
 0x5a3   :  { %1686 = vmatprep.subr.bf16.mxu0 %v1685_v33  ;;  %v1843_v40 = vpop.eup %1842 }
 0x5a4   :  { %v1845_v47 = vpop.eup %1844  ;;  %v849_v48 = vmul.f32 %v1843_v40, %v1833_v12  ;;  %v1133_v40 = vld [vmem:[%s2276_s4 + $0x18] sm:$0xff] }
 0x5a5   :  { %1560 = vmatmul.mubr.msk.f32.vlgmr.msra.gmra.mrb[0].mxu0 %vm216_vm3, %v238_v38  ;;  %v850_v49 = vmul.f32 %v1845_v47, %v1831_v10  ;;  %v1131_v38 = vld [vmem:[%s2276_s4 + $0x8] sm:$0xff] }
 0x5a6   :  { %1688 = vmatpush3.bf16.msra.mxu0 %v1685_v33  ;;  %1573 = vmatprep.mubr.msk.f32.mxu0 %vm216_vm3, %v441_v39  ;;  %v1132_v39 = vld [vmem:[%s2276_s4 + $0x10] sm:$0xff] }
 0x5a7   :  { %1706 = vmatprep.subr.bf16.mxu0 %v1705_v41 }
 0x5a9   :  { %1574 = vmatmul.mubr.msk.f32.vlgmr.msra.gmra.mrb[2].mxu0 %vm216_vm3, %v442_v43 }
 0x5aa   :  { %1708 = vmatpush3.bf16.msra.mxu0 %v1705_v41  ;;  %1601 = vmatprep.mubr.msk.f32.mxu0 %vm216_vm3, %v849_v48  ;;  %v1721_v41 = vpack.c.bf16 %v1133_v40, %v1132_v39 }
 0x5ab   :  { %1710 = vmatprep.subr.bf16.mxu0 %v1709_v54 }
 0x5ad   :  { %1602 = vmatmul.mubr.msk.f32.vlgmr.msra.gmra.mrb[4].mxu0 %vm216_vm3, %v850_v49 }
 0x5ae   :  { %1712 = vmatpush3.bf16.msra.mxu0 %v1709_v54  ;;  %v1120_v54 = vsub.s32 2, %v1969_v9 }
 0x5af   :  { %1714 = vmatprep.subr.bf16.mxu0 %v1713_v57 }
 0x5b0   :  { %v1121_v56 = vrot.slane %v1975_v11, %v1120_v54 }
 0x5b2   :  { %1716 = vmatpush3.bf16.msra.mxu0 %v1713_v57 }
 0x678   :  { %v1561_v42 = vpop.f32.mrb[0].mxu0 }
 0x679   :  { %v317_v44 = vpop.f32.mrb[1].mxu0 }
 0x67c   :  { %v1575_v58 = vpop.f32.mrb[2].mxu0 }
 0x67d   :  { %942 = vrot.lane.b32.xlu1 %v1575_v58, %s1897_s11  ;;  %v521_v59 = vpop.f32.mrb[3].mxu0 }
 0x67e   :  { %940 = vrot.lane.b32.xlu0 %v521_v59, %s1897_s11 }
 0x680   :  { %v1603_v60 = vpop.f32.mrb[4].mxu0 }
 0x681   :  { %950 = vrot.lane.b32.xlu1 %v2078_v34, %s1898_s12  ;;  %v929_v62 = vpop.f32.mrb[5].mxu0 }
 0x682   :  { %948 = vrot.lane.b32.xlu0 %v2080_v36, %s1898_s12 }
 0x685   :  { %958 = vrot.lane.b32.xlu1 %v1603_v60, %s1899_s3 }
 0x686   :  { %956 = vrot.lane.b32.xlu0 %v929_v62, %s1899_s3 }
 0x6ef   :  { %v943_v0 = vpop.permute.xlu1 %942 }
 0x6f0   :  { %v941_v2 = vpop.permute.xlu0 %940  ;;  %v963_v12 = vsel %vm128_vm1, %v1561_v42, %v943_v0 }
 0x6f1   :  { %v962_v8 = vsel %vm128_vm1, %v317_v44, %v941_v2  ;;  %v1127_v44 = vrot.slane %v1975_v11, %v1126_v55 }
 0x6f3   :  { %v951_v4 = vpop.permute.xlu1 %950 }
 0x6f4   :  { %v949_v6 = vpop.permute.xlu0 %948  ;;  %v965_v14 = vsel %vm216_vm3, %v963_v12, %v951_v4  ;;  %v1273_v4 = vld [vmem:[%s2277_s5] sm:$0xff]  ;;  %v1276_v12 = vld [vmem:[%s2277_s5 + $0x18] sm:$0xff] }
 0x6f5   :  { %v964_v13 = vsel %vm216_vm3, %v962_v8, %v949_v6  ;;  %v1274_v6 = vld [vmem:[%s2277_s5 + $0x8] sm:$0xff] }
 0x6f6   :  { %v1725_v8 = vpack.c.bf16 %v1274_v6, %v1273_v4 }
 0x6f7   :  { %v959_v10 = vpop.permute.xlu1 %958 }
 0x6f8   :  { %v957_v34 = vpop.permute.xlu0 %956  ;;  %v968_v36 = vsel %vm966_vm4, %v965_v14, %v959_v10  ;;  %1726 = vmatprep.subr.bf16.mxu0 %v1725_v8  ;;  %v1275_v10 = vld [vmem:[%s2277_s5 + $0x10] sm:$0xff]  ;;  %v1278_v14 = vld [vmem:[%s2277_s5 + $0x28] sm:$0xff] }
 0x6f9   :  { %v967_v15 = vsel %vm966_vm4, %v964_v13, %v957_v34  ;;  %v1729_v13 = vpack.c.bf16 %v1276_v12, %v1275_v10  ;;  %v1277_v34 = vld [vmem:[%s2277_s5 + $0x20] sm:$0xff] }
 0x6fa   :  { %1612 = vmatprep.mubr.msk.f32.mxu0 %vm40_vm0, %v967_v15  ;;  %v1733_v15 = vpack.c.bf16 %v1278_v14, %v1277_v34 }
 0x6fb   :  { %1613 = vmatmul.mubr.msk.f32.vlgmr.msra.gmra.mrb[6].mxu0 %vm40_vm0, %v968_v36  ;;  %v1279_v36 = vld [vmem:[%s2277_s5 + $0x30] sm:$0xff] }
 0x6fc   :  { %1728 = vmatpush3.bf16.msra.mxu0 %v1725_v8 }
 0x6fd   :  { %1730 = vmatprep.subr.bf16.mxu0 %v1729_v13 }
 0x700   :  { %1732 = vmatpush3.bf16.msra.mxu0 %v1729_v13 }
 0x701   :  { %1734 = vmatprep.subr.bf16.mxu0 %v1733_v15 }
 0x704   :  { %1736 = vmatpush3.bf16.msra.mxu0 %v1733_v15 }
 0x7ce   :  { %v1614_v19 = vpop.f32.mrb[6].mxu0 }
 0x7cf   :  { %v1086_v20 = vadd.f32 %v1614_v19, %v1007_v18  ;;  %v1080_v22 = vpop.f32.mrb[7].mxu0  ;;  %v1281_v19 = vld [vmem:[%s2277_s5 + $0x40] sm:$0xff] }
 0x7d0   :  { %v1081_v23 = vadd.f32 %v1080_v22, %v1007_v18  ;;  %v1737_v18 = vpack.c.bf16 %v1280_v16, %v1279_v36 }
 0x7d1   :  { %v1090_v24 = vadd.f32 %v1086_v20, %v1965_v7  ;;  %v1282_v20 = vld [vmem:[%s2277_s5 + $0x48] sm:$0xff] }
 0x7d2   :  { %v1089_v25 = vadd.f32 %v1081_v23, %v1958_v5  ;;  %v1130_v5 = vld [vmem:[%s2276_s4] sm:$0xff]  ;;  %1738 = vmatprep.subr.bf16.mxu0 %v1737_v18  ;;  %v1741_v22 = vpack.c.bf16 %v1282_v20, %v1281_v19  ;;  %v1283_v23 = vld [vmem:[%s2277_s5 + $0x50] sm:$0xff] }
 0x7d3   :  { %v1094_v26 = vsel %vm40_vm0, %v1090_v24, 0.0  ;;  %v1717_v21 = vpack.c.bf16 %v1131_v38, %v1130_v5  ;;  %1740 = vmatpush3.bf16.msra.mxu0 %v1737_v18 }
 0x7d4   :  { %1095 = vadd.xlane.f32.xlu1 %v1094_v26  ;;  %v1091_v27 = vsel %vm40_vm0, %v1089_v25, 0.0  ;;  %1742 = vmatprep.subr.bf16.mxu0 %v1741_v22  ;;  %v1285_v26 = vld [vmem:[%s2277_s5 + $0x60] sm:$0xff] }
 0x7d5   :  { %1092 = vadd.xlane.f32.xlu0 %v1091_v27  ;;  %1718 = vmatprep.subr.bf16.mxu1 %v1717_v21  ;;  %v1286_v27 = vld [vmem:[%s2277_s5 + $0x68] sm:$0xff] }
 0x7d6   :  { %1720 = vmatpush3.bf16.msra.mxu1 %v1717_v21 }
 0x7d7   :  { %1722 = vmatprep.subr.bf16.mxu1 %v1721_v41  ;;  %1744 = vmatpush3.bf16.msra.mxu0 %v1741_v22 }
 0x7da   :  { %1724 = vmatpush3.bf16.msra.mxu1 %v1721_v41 }
 0x861   :  { %v1096_v28 = vpop.xlane.xlu1 %1095 }
 0x862   :  { %v1099_v29 = vmul.f32 0.03125, %v1096_v28  ;;  %v1093_v30 = vpop.xlane.xlu0 %1092  ;;  %v1749_v28 = vpack.c.bf16 %v1286_v27, %v1285_v26 }
 0x863   :  { %v1098_v31 = vmul.f32 0.03125, %v1093_v30  ;;  %v1288_v30 = vld [vmem:[%s2277_s5 + $0x78] sm:$0xff] }
 0x864   :  { %v1101_v32 = vsub.f32 %v1090_v24, %v1099_v29  ;;  %v1284_v24 = vld [vmem:[%s2277_s5 + $0x58] sm:$0xff]  ;;  %v1287_v29 = vld [vmem:[%s2277_s5 + $0x70] sm:$0xff]  ;;  %s1900_s5 = smov 32  }
 0x865   :  { %v1100_v17 = vsub.f32 %v1089_v25, %v1098_v31  ;;  %v1745_v25 = vpack.c.bf16 %v1284_v24, %v1283_v23  ;;  %v1753_v31 = vpack.c.bf16 %v1288_v30, %v1287_v29 }
 0x866   :  { %v1103_v37 = vmul.f32 %v1101_v32, %v1101_v32 }
 0x867   :  { %v1102_v33 = vmul.f32 %v1100_v17, %v1100_v17  ;;  %1746 = vmatprep.subr.bf16.mxu0 %v1745_v25 }
 0x868   :  { %v1107_v7 = vsel %vm40_vm0, %v1103_v37, 0.0  ;;  %1748 = vmatpush3.bf16.msra.mxu0 %v1745_v25 }
 0x869   :  { %v1104_v35 = vsel %vm40_vm0, %v1102_v33, 0.0  ;;  %1750 = vmatprep.subr.bf16.mxu0 %v1749_v28 }
 0x86a   :  { %1105 = vadd.xlane.f32.xlu0 %v1104_v35 }
 0x86c   :  { %1752 = vmatpush3.bf16.msra.mxu0 %v1749_v28 }
 0x86d   :  { %1754 = vmatprep.subr.bf16.mxu0 %v1753_v31 }
 0x86e   :  { %1108 = vadd.xlane.f32.xlu0 %v1107_v7 }
 0x870   :  { %1756 = vmatpush3.bf16.msra.mxu0 %v1753_v31 }
 0x8f7   :  { %v1106_v43 = vpop.xlane.xlu0 %1105 }
 0x8f8   :  { %v1110_v47 = vmul.f32 0.03125, %v1106_v43 }
 0x8fa   :  { %v1112_v48 = vadd.f32 1e-12, %v1110_v47 }
 0x8fb   :  { %v1109_v49 = vpop.xlane.xlu0 %1108 }
 0x8fc   :  { %1846 = vrsqrt.f32 %v1112_v48  ;;  %v1111_v52 = vmul.f32 0.03125, %v1109_v49 }
 0x8fe   :  { %v1113_v53 = vadd.f32 1e-12, %v1111_v52 }
 0x900   :  { %1848 = vrsqrt.f32 %v1113_v53 }
 0x906   :  { %v1847_v57 = vpop.eup %1846 }
 0x907   :  { %v1116_v42 = vmul.f32 %v1847_v57, %v1100_v17 }
 0x909   :  { %v1122_v58 = vmul.f32 %v1121_v56, %v1116_v42 }
 0x90a   :  { %v1849_v59 = vpop.eup %1848 }
 0x90b   :  { %v1117_v60 = vmul.f32 %v1849_v59, %v1101_v32  ;;  %v2167_v62 = vadd.f32 %v1127_v44, %v1122_v58  ;;  %v1136_v32 = vsub.s32 4, %v1969_v9 }
 0x90d   :  { %v1123_v0 = vmul.f32 %v1121_v56, %v1117_v60  ;;  %1623 = vmatprep.mubr.msk.f32.mxu1 %vm40_vm0, %v2167_v62  ;;  %v1137_v17 = vrot.slane %v1975_v11, %v1136_v32 }
 0x90f   :  { %v2171_v2 = vadd.f32 %v1127_v44, %v1123_v0 }
 0x911   :  { %1624 = vmatmul.mubr.msk.f32.vlgmr.msra.gmra.mrb[12].mxu1 %vm40_vm0, %v2171_v2 }
 0x9e4   :  { %v1625_v33 = vpop.f32.mrb[12].mxu1 }
 0x9e5   :  { %v1216_v35 = vadd.f32 %v1625_v33, %v1137_v17  ;;  %v1210_v37 = vpop.f32.mrb[13].mxu1 }
 0x9e6   :  { %v1211_v7 = vadd.f32 %v1210_v37, %v1137_v17 }
 0x9e7   :  { %v1222_v5 = vmul.f32 0.70710677, %v1216_v35  ;;  %v1220_v17 = vmul.f32 0.5, %v1216_v35 }
 0x9e8   :  { %v1221_v38 = vmul.f32 0.70710677, %v1211_v7  ;;  %v1219_v31 = vmul.f32 0.5, %v1211_v7 }
 0x9e9   :  { %v1224_v21 = vand.u32 2147483647, %v1222_v5  ;;  %vm1264_vm5 = vcmp.ge.f32.partialorder %v1222_v5, 0.0 }
 0x9ea   :  { %v1223_v39 = vand.u32 2147483647, %v1221_v38  ;;  %vm1263_vm6 = vcmp.ge.f32.partialorder %v1221_v38, 0.0 }
 0x9eb   :  { %v1226_v40 = vmul.f32 0.3275911, %v1224_v21  ;;  %v1252_v48 = vsub.f32 0.0, %v1224_v21 }
 0x9ec   :  { %v1225_v41 = vmul.f32 0.3275911, %v1223_v39  ;;  %v1251_v49 = vsub.f32 0.0, %v1223_v39 }
 0x9ed   :  { %v1228_v43 = vadd.f32 1.0, %v1226_v40  ;;  %v1254_v53 = vmul.f32 %v1252_v48, %v1224_v21  ;;  %v1291_v21 = vsub.s32 5, %v1969_v9 }
 0x9ee   :  { %v1227_v47 = vadd.f32 1.0, %v1225_v41  ;;  %v1253_v56 = vmul.f32 %v1251_v49, %v1223_v39 }
 0x9ef   :  { %1850 = vrcp.f32 %v1228_v43  ;;  %v1257_v44 = vmul.f32 1.442695, %v1254_v53  ;;  %v1292_v39 = vrot.slane %v1975_v11, %v1291_v21 }
 0x9f0   :  { %1852 = vrcp.f32 %v1227_v47  ;;  %v1255_v60 = vmul.f32 1.442695, %v1253_v56 }
 0x9f1   :  { %1854 = vpow2.f32 %v1257_v44 }
 0x9f2   :  { %1856 = vpow2.f32 %v1255_v60 }
 0x9f9   :  { %v1851_v52 = vpop.eup %1850 }
 0x9fa   :  { %v1853_v54 = vpop.eup %1852  ;;  %v1234_v55 = vmul.f32 1.0614054, %v1851_v52 }
 0x9fb   :  { %v1233_v57 = vmul.f32 1.0614054, %v1853_v54  ;;  %v1855_v18 = vpop.eup %1854 }
 0x9fc   :  { %v1236_v42 = vadd.f32 -1.4531521, %v1234_v55  ;;  %v1857_v20 = vpop.eup %1856 }
 0x9fd   :  { %v1235_v58 = vadd.f32 -1.4531521, %v1233_v57 }
 0x9fe   :  { %v1238_v59 = vmul.f32 %v1851_v52, %v1236_v42 }
 0x9ff   :  { %v1237_v0 = vmul.f32 %v1853_v54, %v1235_v58 }
 0xa00   :  { %v1240_v4 = vadd.f32 1.4214138, %v1238_v59 }
 0xa01   :  { %v1239_v6 = vadd.f32 1.4214138, %v1237_v0 }
 0xa02   :  { %v1242_v8 = vmul.f32 %v1851_v52, %v1240_v4 }
 0xa03   :  { %v1241_v10 = vmul.f32 %v1853_v54, %v1239_v6 }
 0xa04   :  { %v1244_v12 = vadd.f32 -0.28449672, %v1242_v8 }
 0xa05   :  { %v1243_v13 = vadd.f32 -0.28449672, %v1241_v10 }
 0xa06   :  { %v1246_v34 = vmul.f32 %v1851_v52, %v1244_v12 }
 0xa07   :  { %v1245_v14 = vmul.f32 %v1853_v54, %v1243_v13  ;;  %v1398_v13 = vsub.s32 6, %v1969_v9 }
 0xa08   :  { %v1248_v15 = vadd.f32 0.2548296, %v1246_v34  ;;  %v1404_v34 = vsub.s32 7, %v1969_v9 }
 0xa09   :  { %v1247_v36 = vadd.f32 0.2548296, %v1245_v14 }
 0xa0a   :  { %v1250_v16 = vmul.f32 %v1851_v52, %v1248_v15 }
 0xa0b   :  { %v1249_v19 = vmul.f32 %v1853_v54, %v1247_v36 }
 0xa0c   :  { %v1260_v22 = vmul.f32 %v1855_v18, %v1250_v16  ;;  %v1405_v16 = vrot.slane %v1975_v11, %v1404_v34 }
 0xa0d   :  { %v1259_v23 = vmul.f32 %v1857_v20, %v1249_v19 }
 0xa0e   :  { %v1262_v24 = vsub.f32 1.0, %v1260_v22 }
 0xa0f   :  { %v1261_v25 = vsub.f32 1.0, %v1259_v23 }
 0xa10   :  { %v1266_v26 = vsub.f32 0.0, %v1262_v24 }
 0xa11   :  { %v1265_v27 = vsub.f32 0.0, %v1261_v25 }
 0xa12   :  { %v1268_v28 = vsel %vm1264_vm5, %v1262_v24, %v1266_v26 }
 0xa13   :  { %v1270_v29 = vadd.f32 1.0, %v1268_v28  ;;  %v1267_v30 = vsel %vm1263_vm6, %v1261_v25, %v1265_v27 }
 0xa14   :  { %v1269_v32 = vadd.f32 1.0, %v1267_v30 }
 0xa15   :  { %v1272_v37 = vmul.f32 %v1270_v29, %v1220_v17 }
 0xa16   :  { %v1271_v33 = vmul.f32 %v1269_v32, %v1219_v31 }
 0xa18   :  { %1658 = vmatprep.mubr.f32.mxu0 %v1271_v33 }
 0xa19   :  { %1659 = vmatmul.mubr.f32.vlgmr.msra.gmra.mrb[8].mxu0 %v1272_v37 }
 0xaec   :  { %v1660_v40 = vpop.f32.mrb[8].mxu0 }
 0xaed   :  { %v1365_v41 = vadd.f32 %v1660_v40, %v1292_v39  ;;  %v1359_v43 = vpop.f32.mrb[9].mxu0 }
 0xaee   :  { %v1360_v5 = vadd.f32 %v1359_v43, %v1292_v39 }
 0xaef   :  { %v1369_v47 = vadd.f32 %v1365_v41, %v2171_v2 }
 0xaf0   :  { %v1368_v38 = vadd.f32 %v1360_v5, %v2167_v62 }
 0xaf1   :  { %v1373_v7 = vsel %vm40_vm0, %v1369_v47, 0.0 }
 0xaf2   :  { %1374 = vadd.xlane.f32.xlu0 %v1373_v7  ;;  %v1370_v35 = vsel %vm40_vm0, %v1368_v38, 0.0 }
 0xaf3   :  { %1371 = vadd.xlane.f32.xlu1 %v1370_v35 }
 0xb04   :  { %971 = vrot.lane.b32.xlu1 %v2060_v3, %s1898_s12 }
 0xb08   :  { %973 = vrot.lane.b32.xlu0 %v2055_v1, %s1898_s12  ;;  %979 = vrot.lane.b32.xlu1 %v2033_v46, %s1900_s5 }
 0xb0c   :  { %987 = vrot.lane.b32.xlu0 %v2088_v51, %s1893_s22  ;;  %981 = vrot.lane.b32.xlu1 %v2030_v45, %s1900_s5 }
 0xb10   :  { %989 = vrot.lane.b32.xlu1 %v2085_v50, %s1893_s22  ;;  %s1901_s22 = smov [#allocation2]  }
 0xb11   :  { %s1428_s12 = sshll.u32 %s1901_s22, 4  ;;  %s1429_s12 = int_to_ptr.vmem [resolvable:$true] %s1428_s12 }
 0xb12   :  { %s1862_s23 = scalar_lea.vmem %s1429_s12, 256  ;;  %p1867_p1 = scmp.lt.s32.totalorder %s1429_s12, %s1429_s12 }
 0xb13   :  { %p1863_p0 = scmp.ne.s32.totalorder %s1429_s12, %s1862_s23  ;;  %p1868_p2 = scmp.lt.s32.totalorder %s1862_s23, %s1862_s23 }
 0xb15   :  { %p1869_p3 = por %p1868_p2, %p1867_p1 }
 0xb17   :  { %p1870_p4 = pnand %p1869_p3, %p1863_p0 }
 0xb7f   :  { %v1375_v62 = vpop.xlane.xlu0 %1374 }
 0xb80   :  { %v1377_v2 = vmul.f32 0.03125, %v1375_v62  ;;  %v1372_v48 = vpop.xlane.xlu1 %1371 }
 0xb81   :  { %v1376_v3 = vmul.f32 0.03125, %v1372_v48 }
 0xb82   :  { %v1379_v49 = vsub.f32 %v1369_v47, %v1377_v2 }
 0xb83   :  { %v1378_v52 = vsub.f32 %v1368_v38, %v1376_v3  ;;  %v974_v56 = vpop.permute.xlu0 %973 }
 0xb84   :  { %v972_v1 = vpop.permute.xlu1 %971  ;;  %v1381_v53 = vmul.f32 %v1379_v49, %v1379_v49  ;;  %v994_v50 = vsel %vm216_vm3, %v2052_v63, %v974_v56 }
 0xb85   :  { %v1380_v54 = vmul.f32 %v1378_v52, %v1378_v52  ;;  %v993_v58 = vsel %vm216_vm3, %v2049_v61, %v972_v1  ;;  %v1399_v61 = vrot.slane %v1975_v11, %v1398_v13 }
 0xb86   :  { %v1385_v46 = vsel %vm40_vm0, %v1381_v53, 0.0 }
 0xb87   :  { %1386 = vadd.xlane.f32.xlu1 %v1385_v46  ;;  %v1382_v51 = vsel %vm40_vm0, %v1380_v54, 0.0  ;;  %v988_v60 = vpop.permute.xlu0 %987 }
 0xb88   :  { %1383 = vadd.xlane.f32.xlu0 %v1382_v51  ;;  %v980_v55 = vpop.permute.xlu1 %979 }
 0xb89   :  { %v995_v59 = vsel %vm40_vm0, %v993_v58, %v980_v55 }
 0xb8a   :  { %v998_v0 = vsel %vm997_vm7, %v995_v59, %v988_v60 }
 0xb8c   :  { %v982_v45 = vpop.permute.xlu1 %981 }
 0xb8d   :  { %v996_v42 = vsel %vm40_vm0, %v994_v50, %v982_v45 }
 0xb90   :  { %v990_v57 = vpop.permute.xlu1 %989 }
 0xb91   :  { %v999_v44 = vsel %vm997_vm7, %v996_v42, %v990_v57 }
 0xb98   :  { %1412 = vrot.lane.b32.xlu1 %v999_v44, %s1900_s5 }
 0xb9e   :  { %1410 = vrot.lane.b32.xlu0 %v998_v0, %s1900_s5 }
 0xc14   :  { %v1387_v4 = vpop.xlane.xlu1 %1386 }
 0xc15   :  { %v1389_v6 = vmul.f32 0.03125, %v1387_v4  ;;  %v1384_v8 = vpop.xlane.xlu0 %1383 }
 0xc16   :  { %v1388_v10 = vmul.f32 0.03125, %v1384_v8 }
 0xc17   :  { %v1391_v63 = vadd.f32 1e-12, %v1389_v6 }
 0xc18   :  { %v1390_v12 = vadd.f32 1e-12, %v1388_v10  ;;  %v1413_v23 = vpop.permute.xlu1 %1412 }
 0xc19   :  { %1858 = vrsqrt.f32 %v1391_v63  ;;  %v1411_v26 = vpop.permute.xlu0 %1410 }
 0xc1a   :  { %1860 = vrsqrt.f32 %v1390_v12 }
 0xc23   :  { %v1859_v14 = vpop.eup %1858 }
 0xc24   :  { %v1861_v15 = vpop.eup %1860  ;;  %v1395_v36 = vmul.f32 %v1859_v14, %v1379_v49 }
 0xc25   :  { %v1394_v18 = vmul.f32 %v1861_v15, %v1378_v52 }
 0xc26   :  { %v1401_v19 = vmul.f32 %v1399_v61, %v1395_v36 }
 0xc27   :  { %v1400_v20 = vmul.f32 %v1399_v61, %v1394_v18 }
 0xc28   :  { %v1407_v22 = vadd.f32 %v1405_v16, %v1401_v19 }
 0xc29   :  { %v1406_v24 = vadd.f32 %v1405_v16, %v1400_v20 }
 0xc2a   :  { %v1417_v25 = vsel %vm40_vm0, %v1407_v22, %v1413_v23 }
 0xc2b   :  { %v1420_v9 = vsel %vm1418_vm8, %v1417_v25, 0.0  ;;  %v1416_v27 = vsel %vm40_vm0, %v1406_v24, %v1411_v26 }
 0xc2c   :  { %1422 = vst [vmem:[#allocation2 + $0x8] sm:$0xff] %v1420_v9  ;;  %v1419_v28 = vsel %vm1418_vm8, %v1416_v27, 0.0 }
 0xc2d   :  { %1421 = vst [vmem:[#allocation2] sm:$0xff] %v1419_v28 }
 0xc2e   :  { %1873 = shalt.err (!%p1870_p4)
}
 0xc2f   :  { %s1874_s26 = scalar_lea.hbm %s2279_s7, 256 }
 0xc30   :  { %p1875_p5 = scmp.ne.s32.totalorder %s2279_s7, %s1874_s26  ;;  %p1878_p6 = scmp.lt.u32.totalorder %s1874_s26, %s2279_s7 }
 0xc32   :  { %p1880_p7 = pnand %p1878_p6, %p1875_p5 }
 0xc34   :  { %1883 = shalt.err (!%p1880_p7)
}
 0xc35   :  { %s1902_s8 = smov 128  }
 0xc36   :  { %1434 = dma.vmem_to_hbm [thread:$0]  %s1429_s12, 256, %s2279_s7, [#allocation3], %s1902_s8, %s1902_s8, %s1897_s11  }
 0xc37   :  { %1884 = dma.done.wait [#allocation3], 256  }
 0xc38   :  { %1885 = vsyncadd [#allocation3], 4294967040 }
 0xc39   :  { %1438 = vsyncpa [#allocation3], 1 }

</bundles_post_ra>
